<compile_context>
chip_gen: v5e
topology: v5e:2x2
jax: 0.10.0
libtpu: 0.0.40
codegen_flags: <defaults>
</compile_context>

<pallas_src>
import functools

import jax
import jax.numpy as jnp
import numpy as np
from jax.experimental import pallas as pl
from jax.experimental.pallas import tpu as pltpu


def _round_up(x, m):
    return (x + m - 1) // m * m


def _cmp_swap(a, b):
    """Compare-exchange: (min, max).  Pure VPU min/max."""
    return jnp.minimum(a, b), jnp.maximum(a, b)


def _median9(v):
    """Median of 9 via the classic 19-compare-exchange selection network
    (Smith / Devillard).  Result ends up in slot 4."""
    v = list(v)

    def s(i, j):
        v[i], v[j] = _cmp_swap(v[i], v[j])

    s(1, 2); s(4, 5); s(7, 8)
    s(0, 1); s(3, 4); s(6, 7)
    s(1, 2); s(4, 5); s(7, 8)
    s(0, 3); s(5, 8); s(4, 7)
    s(3, 6); s(1, 4); s(2, 5)
    s(4, 7); s(4, 2); s(6, 4)
    s(4, 2)
    return v[4]


def _minmax_to_ends(v):
    """Compare-exchange network putting min(v) at v[0] and max(v) at v[-1]
    while preserving the multiset (~1.5*len(v) CEs)."""
    s = len(v)
    h = s // 2
    for i in range(h):                        # pair lows / highs
        v[i], v[i + h] = _cmp_swap(v[i], v[i + h])
    for i in range(1, h):                     # min of low half -> v[0]
        v[0], v[i] = _cmp_swap(v[0], v[i])
    if s % 2:                                 # odd: unpaired tail joins both sides
        v[0], v[s - 1] = _cmp_swap(v[0], v[s - 1])
    for i in range(h, s - 1):                 # max of high half -> v[-1]
        v[i], v[s - 1] = _cmp_swap(v[i], v[s - 1])
    return v


def _median_forgetful(load_tap, k):
    """Forgetful selection: median of k (odd) candidates, loaded lazily via
    load_tap(i).  The live working set never exceeds (k+3)//2 arrays."""
    s0 = (k + 3) // 2
    work = [load_tap(i) for i in range(s0)]
    nxt = s0
    while True:
        work = _minmax_to_ends(work)
        work = work[1:-1]                     # global min & max cannot be the median
        if nxt < k:
            work.append(load_tap(nxt))
            nxt += 1
        else:
            break
    assert len(work) == 1
    return work[0]


def _median_blur_kernel(xf_ref, out_ref, *, kh, kw, wp, lout, chunk, max_off):
    # xf_ref : (TN, Lin)  flattened zero-padded images (row-major (Hp, Wp) + tail pad)
    # out_ref: (TN, Lout) flattened outputs in padded-column layout (flat = r*Wp + c)
    k = kh * kw
    offsets = tuple(di * wp + dj for di in range(kh) for dj in range(kw))
    span = chunk + max_off                    # chunk + halo (static)
    nchunks = lout // chunk

    def process(base):
        region = xf_ref[:, pl.ds(base, span)]

        def load_tap(t):
            off = offsets[t]
            return region[:, off:off + chunk]

        if k == 9:
            med = _median9([load_tap(t) for t in range(k)])
        else:
            med = _median_forgetful(load_tap, k)
        out_ref[:, pl.ds(base, chunk)] = med

    if nchunks == 1:
        process(0)
    else:
        def body(ci, carry):
            process(pl.multiple_of(ci * chunk, 128))
            return carry

        jax.lax.fori_loop(0, nchunks, body, 0, unroll=nchunks <= 8)


def median_blur(x: jax.Array, kernel_size=(3, 3), *, lane_chunk=512,
                block_bytes=4 << 20) -> jax.Array:
    """Median blur of an NCHW tensor, matching MedianBlur.forward."""
    kh, kw = kernel_size
    if kh % 2 != 1 or kw % 2 != 1:
        raise ValueError("median_blur requires odd kernel sizes")
    ph, pw = (kh - 1) // 2, (kw - 1) // 2
    b, c, h, w = x.shape
    n = b * c
    hp, wp = h + 2 * ph, w + 2 * pw

    max_off = (kh - 1) * wp + (kw - 1)        # largest tap lane offset
    lout_raw = h * wp                         # valid outputs at flat r*wp + c, c < w
    chunk = min(lane_chunk, _round_up(lout_raw, 128))
    lout = _round_up(lout_raw, chunk)         # lane-dense, unmasked stores
    lin = _round_up(lout + max_off, 128)

    itemsize = jnp.dtype(x.dtype).itemsize
    sub = 8 * max(1, 4 // itemsize)           # sublane tile: 8 (f32), 16 (bf16), 32 (i8)

    # Images per grid step: large enough to amortize per-step overhead, small
    # enough that (in+out) double-buffered blocks stay under scoped VMEM on all
    # generations (v5e 16 MiB default, v7x 64 MiB physical).
    per_image = (lin + lout) * itemsize
    tn = max(sub, (block_bytes // per_image) // sub * sub)
    n_sub = _round_up(n, sub)
    tn = min(tn, n_sub)
    if n_sub >= 2 * sub:                      # keep >= 2 grid steps for v7x megacore
        tn = min(tn, max(sub, (n_sub // 2) // sub * sub))
    n_pad = _round_up(n, tn)
    grid_n = n_pad // tn

    # TODO(synk): for very large images (whole flattened image >> VMEM, e.g. 2k x 2k
    # on v7x's 64 MiB) add a second halo'd spatial grid axis instead of one whole
    # image per lane axis.

    xp = jnp.pad(x.reshape(n, h, w), ((0, n_pad - n), (ph, ph), (pw, pw)))
    xf = jnp.pad(xp.reshape(n_pad, hp * wp), ((0, 0), (0, lin - hp * wp)))

    out = pl.pallas_call(
        functools.partial(_median_blur_kernel, kh=kh, kw=kw, wp=wp,
                          lout=lout, chunk=chunk, max_off=max_off),
        out_shape=jax.ShapeDtypeStruct((n_pad, lout), x.dtype),
        grid=(grid_n,),
        in_specs=[pl.BlockSpec((tn, lin), lambda i: (i, 0))],
        out_specs=pl.BlockSpec((tn, lout), lambda i: (i, 0)),
        compiler_params=pltpu.CompilerParams(
            dimension_semantics=("parallel",)),
    )(xf)

    out = out[:n, :lout_raw].reshape(n, h, wp)[:, :, :w]
    return out.reshape(b, c, h, w)


def _reference_median_blur(x, kernel_size=(3, 3)):
    """Pure-jnp reference replicating the PyTorch module semantics."""
    kh, kw = kernel_size
    ph, pw = (kh - 1) // 2, (kw - 1) // 2
    b, c, h, w = x.shape
    xp = jnp.pad(x, ((0, 0), (0, 0), (ph, ph), (pw, pw)))
    taps = [xp[:, :, di:di + h, dj:dj + w]
            for di in range(kh) for dj in range(kw)]
    feats = jnp.stack(taps, axis=2)           # (B, C, K, H, W)
    srt = jnp.sort(feats, axis=2)
    m = (kh * kw - 1) // 2                    # lower median (torch.median)
    return srt[:, :, m, :, :]


if __name__ == "__main__":
    key = jax.random.PRNGKey(0)
    x = jax.random.uniform(key, (2, 4, 16, 16), dtype=jnp.float32)

    y = jax.block_until_ready(median_blur(x, kernel_size=(3, 3)))

    y_ref = _reference_median_blur(x, kernel_size=(3, 3))
    np.testing.assert_allclose(np.asarray(y), np.asarray(y_ref), rtol=0, atol=0)

    print("KERNEL_OK")
</pallas_src>

<mosaic_0001>
module attributes {stable_mosaic.version = 11 : i64} {
  func.func @_median_blur_kernel(%arg0: i32, %arg1: memref<8x512xf32, #tpu.memory_space<vmem>>, %arg2: memref<8x384xf32, #tpu.memory_space<vmem>>) attributes {dimension_semantics = [#tpu.dimension_semantics<parallel>], iteration_bounds = array<i64: 1>, scalar_prefetch = 0 : i64, scratch_operands = 0 : i64, tpu.core_type = #tpu.core_type<tc>, window_params = [{transform_indices = @transform_0, window_bounds = array<i64: 8, 512>}, {transform_indices = @transform_1, window_bounds = array<i64: 8, 384>}]} {
    %c0 = arith.constant 0 : index
    %c0_0 = arith.constant 0 : index
    %0 = vector.load %arg1[%c0, %c0_0] : memref<8x512xf32, #tpu.memory_space<vmem>>, vector<8x422xf32>
    %1 = vector.extract_strided_slice %0 {offsets = [0, 0], sizes = [8, 384], strides = [1, 1]} : vector<8x422xf32> to vector<8x384xf32>
    %2 = vector.extract_strided_slice %0 {offsets = [0, 1], sizes = [8, 384], strides = [1, 1]} : vector<8x422xf32> to vector<8x384xf32>
    %3 = vector.extract_strided_slice %0 {offsets = [0, 2], sizes = [8, 384], strides = [1, 1]} : vector<8x422xf32> to vector<8x384xf32>
    %4 = vector.extract_strided_slice %0 {offsets = [0, 18], sizes = [8, 384], strides = [1, 1]} : vector<8x422xf32> to vector<8x384xf32>
    %5 = vector.extract_strided_slice %0 {offsets = [0, 19], sizes = [8, 384], strides = [1, 1]} : vector<8x422xf32> to vector<8x384xf32>
    %6 = vector.extract_strided_slice %0 {offsets = [0, 20], sizes = [8, 384], strides = [1, 1]} : vector<8x422xf32> to vector<8x384xf32>
    %7 = vector.extract_strided_slice %0 {offsets = [0, 36], sizes = [8, 384], strides = [1, 1]} : vector<8x422xf32> to vector<8x384xf32>
    %8 = vector.extract_strided_slice %0 {offsets = [0, 37], sizes = [8, 384], strides = [1, 1]} : vector<8x422xf32> to vector<8x384xf32>
    %9 = vector.extract_strided_slice %0 {offsets = [0, 38], sizes = [8, 384], strides = [1, 1]} : vector<8x422xf32> to vector<8x384xf32>
    %10 = arith.minimumf %2, %3 : vector<8x384xf32>
    %11 = arith.maximumf %2, %3 : vector<8x384xf32>
    %12 = arith.minimumf %5, %6 : vector<8x384xf32>
    %13 = arith.maximumf %5, %6 : vector<8x384xf32>
    %14 = arith.minimumf %8, %9 : vector<8x384xf32>
    %15 = arith.maximumf %8, %9 : vector<8x384xf32>
    %16 = arith.minimumf %1, %10 : vector<8x384xf32>
    %17 = arith.maximumf %1, %10 : vector<8x384xf32>
    %18 = arith.minimumf %4, %12 : vector<8x384xf32>
    %19 = arith.maximumf %4, %12 : vector<8x384xf32>
    %20 = arith.minimumf %7, %14 : vector<8x384xf32>
    %21 = arith.maximumf %7, %14 : vector<8x384xf32>
    %22 = arith.minimumf %17, %11 : vector<8x384xf32>
    %23 = arith.maximumf %17, %11 : vector<8x384xf32>
    %24 = arith.minimumf %19, %13 : vector<8x384xf32>
    %25 = arith.maximumf %19, %13 : vector<8x384xf32>
    %26 = arith.minimumf %21, %15 : vector<8x384xf32>
    %27 = arith.maximumf %21, %15 : vector<8x384xf32>
    %28 = arith.maximumf %16, %18 : vector<8x384xf32>
    %29 = arith.minimumf %25, %27 : vector<8x384xf32>
    %30 = arith.minimumf %24, %26 : vector<8x384xf32>
    %31 = arith.maximumf %24, %26 : vector<8x384xf32>
    %32 = arith.maximumf %28, %20 : vector<8x384xf32>
    %33 = arith.maximumf %22, %30 : vector<8x384xf32>
    %34 = arith.minimumf %23, %29 : vector<8x384xf32>
    %35 = arith.minimumf %33, %31 : vector<8x384xf32>
    %36 = arith.minimumf %35, %34 : vector<8x384xf32>
    %37 = arith.maximumf %35, %34 : vector<8x384xf32>
    %38 = arith.maximumf %32, %36 : vector<8x384xf32>
    %39 = arith.minimumf %38, %37 : vector<8x384xf32>
    %c0_1 = arith.constant 0 : index
    %c0_2 = arith.constant 0 : index
    %40 = vector.load %arg2[%c0_1, %c0_2] : memref<8x384xf32, #tpu.memory_space<vmem>>, vector<8x384xf32>
    tpu.vector_store %arg2[%c0_1, %c0_2], %39 {strides = array<i32>} : memref<8x384xf32, #tpu.memory_space<vmem>>, vector<8x384xf32>,
    return
  }
  func.func @transform_0(%arg0: i32) -> (i32, i32) {
    %c0_i32 = arith.constant 0 : i32
    %c0_i32_0 = arith.constant 0 : i32
    return %arg0, %c0_i32 : i32, i32
  }
  func.func @transform_1(%arg0: i32) -> (i32, i32) {
    %c0_i32 = arith.constant 0 : i32
    %c0_i32_0 = arith.constant 0 : i32
    return %arg0, %c0_i32 : i32, i32
  }
}

</mosaic_0001>

<bundles_post_ra>
// kernel: tpu_custom_call.1
= control target key start
LH: loop header
LB: loop body
LE: loop exit
PB: predicated region body
PF: predicated region fallthrough
CT: control target
= control target key end

     0   :  { %6 = vsyncpa [#allocation3], 0  ;;  %s502_s0 = inlined_call_operand.hbm [shape: f32[8,512], index: 0, kind: input, shape index: {}]   ;;  %s503_s1 = inlined_call_operand.hbm [shape: f32[8,384], index: 1, kind: output, shape index: {}]  }
   0x1   :  { %7 = vsyncpa [#allocation4], 0  ;;  %s13_s8 = sshll.u32 %s502_s0, 4  ;;  %s351_s9 = smov [#allocation2]   ;;  %s14_s8 = int_to_ptr.hbm [resolvable:$true] %s13_s8 }
   0x2   :  { %s15_s10 = sshll.u32 %s351_s9, 4  ;;  %s16_s10 = int_to_ptr.vmem [resolvable:$true] %s15_s10 }
   0x3   :  { %18 = dma.hbm_to_vmem [thread:$0]  %s14_s8, 512, %s16_s10, [#allocation3]  }
   0x4   :  { %347 = dma.done.wait [#allocation3], 512  }
   0x5   :  { %348 = vsyncadd [#allocation3], 4294966784  ;;  %v369_v0 = vld [vmem:[#allocation2 + $0x10] sm:$0xff]  ;;  %v371_v1 = vld [vmem:[#allocation2] sm:$0xff]  ;;  %s352_s11 = smov 127   ;;  %vm39_vm0 = vcmask 1039360  }
   0x6   :  { %35 = vrot.lane.b32.xlu1 %v369_v0, %s352_s11  ;;  %31 = vrot.lane.b32.xlu0 %v371_v1, %s352_s11  ;;  %v375_v2 = vld [vmem:[#allocation2 + $0x18] sm:$0xff]  ;;  %v24_v3 = vld [vmem:[#allocation2 + $0x8] sm:$0xff]  ;;  %s353_s0 = smov 110   ;;  %s354_s12 = smov 92   ;;  %vm121_vm1 = vcmask 900096   ;;  %vm189_vm2 = vcmask 752640  }
   0x7   :  { %s355_s13 = smov [#allocation5]   ;;  %s284_s17 = sshll.u32 %s503_s1, 4  ;;  %s285_s17 = int_to_ptr.hbm [resolvable:$true] %s284_s17 }
   0x8   :  { %s282_s14 = sshll.u32 %s355_s13, 4  ;;  %s283_s14 = int_to_ptr.vmem [resolvable:$true] %s282_s14 }
   0xe   :  { %37 = vrot.lane.b32.xlu1 %v375_v2, %s352_s11  ;;  %33 = vrot.lane.b32.xlu0 %v24_v3, %s352_s11 }
  0x78   :  { %v36_v4 = vpop.permute.xlu1 %35  ;;  %v32_v5 = vpop.permute.xlu0 %31 }
  0x80   :  { %v38_v6 = vpop.permute.xlu1 %37  ;;  %v34_v7 = vpop.permute.xlu0 %33 }
  0x81   :  { %v42_v8 = vsel %vm39_vm0, %v36_v4, %v38_v6  ;;  %v50_v9 = vmin.f32 %v375_v2, %v38_v6  ;;  %v40_v10 = vsel %vm39_vm0, %v32_v5, %v34_v7  ;;  %v41_v13 = vsel %vm39_vm0, %v34_v7, %v36_v4 }
  0x82   :  { %v49_v11 = vmin.f32 %v369_v0, %v42_v8  ;;  %v47_v12 = vmin.f32 %v371_v1, %v40_v10  ;;  %v53_v14 = vmax.f32 %v369_v0, %v42_v8  ;;  %v48_v15 = vmin.f32 %v24_v3, %v41_v13 }
  0x83   :  { %65 = vrot.lane.b32.xlu1 %v50_v9, %s352_s11  ;;  %v52_v16 = vmax.f32 %v24_v3, %v41_v13  ;;  %v51_v17 = vmax.f32 %v371_v1, %v40_v10  ;;  %v54_v18 = vmax.f32 %v375_v2, %v38_v6 }
  0x84   :  { %63 = vrot.lane.b32.xlu0 %v49_v11, %s352_s11  ;;  %59 = vrot.lane.b32.xlu2 %v47_v12, %s352_s11 }
  0x8b   :  { %90 = vrot.lane.b32.xlu1 %v53_v14, %s352_s11 }
  0x8c   :  { %88 = vrot.lane.b32.xlu0 %v52_v16, %s352_s11  ;;  %61 = vrot.lane.b32.xlu2 %v48_v15, %s352_s11 }
  0x94   :  { %86 = vrot.lane.b32.xlu2 %v51_v17, %s352_s11 }
  0x9c   :  { %92 = vrot.lane.b32.xlu2 %v54_v18, %s352_s11 }
  0xde   :  { %v60_v19 = vpop.permute.xlu2 %59 }
  0xe6   :  { %v62_v20 = vpop.permute.xlu2 %61 }
  0xe7   :  { %v67_v21 = vsel %vm39_vm0, %v60_v19, %v62_v20 }
  0xe8   :  { %v389_v22 = vmin.f32 %v371_v1, %v67_v21  ;;  %v76_v42 = vmax.f32 %v371_v1, %v67_v21 }
  0xea   :  { %113 = vrot.lane.b32.xlu2 %v389_v22, %s353_s0 }
  0xee   :  { %v87_v23 = vpop.permute.xlu2 %86 }
  0xf5   :  { %v66_v24 = vpop.permute.xlu1 %65 }
  0xf6   :  { %v81_v25 = vmax.f32 %v375_v2, %v66_v24  ;;  %v93_v26 = vpop.permute.xlu2 %92  ;;  %v64_v27 = vpop.permute.xlu0 %63  ;;  %v80_v48 = vmin.f32 %v375_v2, %v66_v24 }
  0xf7   :  { %v69_v30 = vsel %vm39_vm0, %v64_v27, %v66_v24  ;;  %v68_v31 = vsel %vm39_vm0, %v62_v20, %v64_v27 }
  0xf8   :  { %v107_v28 = vmin.f32 %v81_v25, %v93_v26  ;;  %v108_v29 = vmax.f32 %v81_v25, %v93_v26  ;;  %v78_v32 = vmax.f32 %v369_v0, %v69_v30  ;;  %v77_v34 = vmax.f32 %v24_v3, %v68_v31 }
  0xf9   :  { %v403_v39 = vmin.f32 %v24_v3, %v68_v31  ;;  %v428_v46 = vmin.f32 %v369_v0, %v69_v30 }
  0xfa   :  { %141 = vrot.lane.b32.xlu1 %v108_v29, %s353_s0  ;;  %164 = vrot.lane.b32.xlu0 %v107_v28, %s353_s0 }
  0xfd   :  { %v91_v33 = vpop.permute.xlu1 %90 }
  0xfe   :  { %v96_v35 = vsel %vm39_vm0, %v91_v33, %v93_v26  ;;  %v89_v36 = vpop.permute.xlu0 %88 }
  0xff   :  { %v400_v37 = vmin.f32 %v78_v32, %v96_v35  ;;  %v95_v38 = vsel %vm39_vm0, %v89_v36, %v91_v33  ;;  %v94_v41 = vsel %vm39_vm0, %v87_v23, %v89_v36  ;;  %v430_v47 = vmax.f32 %v78_v32, %v96_v35 }
 0x100   :  { %v405_v40 = vmin.f32 %v77_v34, %v95_v38  ;;  %v415_v43 = vmax.f32 %v77_v34, %v95_v38  ;;  %v417_v44 = vmin.f32 %v76_v42, %v94_v41  ;;  %v419_v45 = vmax.f32 %v76_v42, %v94_v41 }
 0x101   :  { %162 = vrot.lane.b32.xlu2 %v400_v37, %s353_s0 }
 0x102   :  { %115 = vrot.lane.b32.xlu0 %v403_v39, %s353_s0  ;;  %160 = vrot.lane.b32.xlu1 %v405_v40, %s353_s0 }
 0x109   :  { %137 = vrot.lane.b32.xlu2 %v415_v43, %s353_s0 }
 0x10a   :  { %135 = vrot.lane.b32.xlu1 %v419_v45, %s353_s0  ;;  %158 = vrot.lane.b32.xlu0 %v417_v44, %s353_s0 }
 0x112   :  { %117 = vrot.lane.b32.xlu1 %v428_v46, %s353_s0  ;;  %139 = vrot.lane.b32.xlu0 %v430_v47, %s353_s0 }
 0x11a   :  { %119 = vrot.lane.b32.xlu0 %v80_v48, %s353_s0 }
 0x122   :  { %181 = vrot.lane.b32.xlu0 %v389_v22, %s354_s12 }
 0x144   :  { %v114_v49 = vpop.permute.xlu2 %113 }
 0x15b   :  { %v163_v54 = vpop.permute.xlu2 %162 }
 0x163   :  { %v138_v63 = vpop.permute.xlu2 %137 }
 0x16c   :  { %v142_v50 = vpop.permute.xlu1 %141  ;;  %v165_v51 = vpop.permute.xlu0 %164 }
 0x16d   :  { %v153_v52 = vmin.f32 %v108_v29, %v142_v50  ;;  %v176_v53 = vmin.f32 %v107_v28, %v165_v51  ;;  %v168_v55 = vsel %vm121_vm1, %v163_v54, %v165_v51  ;;  %v180_v58 = vmax.f32 %v107_v28, %v165_v51 }
 0x16e   :  { %v175_v61 = vmin.f32 %v400_v37, %v168_v55  ;;  %v179_v11 = vmax.f32 %v400_v37, %v168_v55 }
 0x16f   :  { %230 = vrot.lane.b32.xlu1 %v153_v52, %s353_s0  ;;  %209 = vrot.lane.b32.xlu2 %v176_v53, %s353_s0 }
 0x174   :  { %v161_v56 = vpop.permute.xlu1 %160  ;;  %v116_v57 = vpop.permute.xlu0 %115 }
 0x175   :  { %v167_v59 = vsel %vm121_vm1, %v161_v56, %v163_v54  ;;  %v445_v60 = vsel %vm121_vm1, %v114_v49, %v116_v57 }
 0x176   :  { %v174_v62 = vmin.f32 %v405_v40, %v167_v59  ;;  %v178_v12 = vmax.f32 %v405_v40, %v167_v59  ;;  %v128_v33 = vmax.f32 %v389_v22, %v445_v60 }
 0x177   :  { %251 = vrot.lane.b32.xlu2 %v180_v58, %s353_s0  ;;  %207 = vrot.lane.b32.xlu1 %v175_v61, %s353_s0 }
 0x178   :  { %205 = vrot.lane.b32.xlu0 %v174_v62, %s353_s0 }
 0x17c   :  { %v136_v0 = vpop.permute.xlu1 %135  ;;  %v159_v1 = vpop.permute.xlu0 %158 }
 0x17d   :  { %v143_v2 = vsel %vm121_vm1, %v136_v0, %v138_v63  ;;  %v166_v3 = vsel %vm121_vm1, %v159_v1, %v161_v56 }
 0x17e   :  { %v150_v4 = vmin.f32 %v419_v45, %v143_v2  ;;  %v173_v5 = vmin.f32 %v417_v44, %v166_v3  ;;  %v177_v13 = vmax.f32 %v417_v44, %v166_v3 }
 0x180   :  { %224 = vrot.lane.b32.xlu1 %v150_v4, %s353_s0  ;;  %203 = vrot.lane.b32.xlu2 %v173_v5, %s353_s0 }
 0x184   :  { %v140_v6 = vpop.permute.xlu0 %139  ;;  %v118_v15 = vpop.permute.xlu1 %117 }
 0x185   :  { %v144_v7 = vsel %vm121_vm1, %v138_v63, %v140_v6  ;;  %v145_v8 = vsel %vm121_vm1, %v140_v6, %v142_v50  ;;  %v123_v29 = vsel %vm121_vm1, %v116_v57, %v118_v15 }
 0x186   :  { %v151_v9 = vmin.f32 %v415_v43, %v144_v7  ;;  %v152_v10 = vmin.f32 %v430_v47, %v145_v8  ;;  %v129_v34 = vmax.f32 %v403_v39, %v123_v29 }
 0x188   :  { %249 = vrot.lane.b32.xlu1 %v179_v11, %s353_s0  ;;  %228 = vrot.lane.b32.xlu0 %v152_v10, %s353_s0 }
 0x189   :  { %226 = vrot.lane.b32.xlu2 %v151_v9, %s353_s0 }
 0x18c   :  { %v120_v17 = vpop.permute.xlu0 %119 }
 0x18d   :  { %v124_v60 = vsel %vm121_vm1, %v118_v15, %v120_v17 }
 0x18e   :  { %v130_v3 = vmax.f32 %v428_v46, %v124_v60 }
 0x190   :  { %183 = vrot.lane.b32.xlu1 %v403_v39, %s354_s12  ;;  %247 = vrot.lane.b32.xlu0 %v178_v12, %s353_s0 }
 0x191   :  { %245 = vrot.lane.b32.xlu2 %v177_v13, %s353_s0 }
 0x194   :  { %v182_v21 = vpop.permute.xlu0 %181 }
 0x198   :  { %187 = vrot.lane.b32.xlu0 %v80_v48, %s354_s12 }
 0x199   :  { %185 = vrot.lane.b32.xlu2 %v428_v46, %s354_s12 }
 0x1c9   :  { %v210_v14 = vpop.permute.xlu2 %209 }
 0x1d1   :  { %v252_v16 = vpop.permute.xlu2 %251 }
 0x1da   :  { %v204_v19 = vpop.permute.xlu2 %203 }
 0x1e1   :  { %v231_v18 = vpop.permute.xlu1 %230 }
 0x1e3   :  { %v227_v23 = vpop.permute.xlu2 %226 }
 0x1e9   :  { %v208_v20 = vpop.permute.xlu1 %207 }
 0x1ea   :  { %v206_v24 = vpop.permute.xlu0 %205  ;;  %v213_v35 = vsel %vm121_vm1, %v208_v20, %v210_v14 }
 0x1eb   :  { %v246_v26 = vpop.permute.xlu2 %245  ;;  %v211_v30 = vsel %vm121_vm1, %v204_v19, %v206_v24  ;;  %v212_v31 = vsel %vm121_vm1, %v206_v24, %v208_v20 }
 0x1ec   :  { %v217_v41 = vmax.f32 %v417_v44, %v211_v30  ;;  %v218_v42 = vmax.f32 %v405_v40, %v212_v31 }
 0x1f2   :  { %v225_v25 = vpop.permute.xlu1 %224 }
 0x1f3   :  { %v232_v32 = vsel %vm121_vm1, %v225_v25, %v227_v23  ;;  %v186_v36 = vpop.permute.xlu2 %185 }
 0x1f4   :  { %v238_v48 = vmin.f32 %v419_v45, %v232_v32  ;;  %v219_v45 = vmax.f32 %v400_v37, %v213_v35 }
 0x1fa   :  { %v250_v27 = vpop.permute.xlu1 %249  ;;  %v229_v28 = vpop.permute.xlu0 %228 }
 0x1fb   :  { %v233_v38 = vsel %vm121_vm1, %v227_v23, %v229_v28  ;;  %v255_v49 = vsel %vm121_vm1, %v250_v27, %v252_v16  ;;  %v234_v54 = vsel %vm121_vm1, %v229_v28, %v231_v18 }
 0x1fc   :  { %v239_v44 = vmin.f32 %v415_v43, %v233_v38  ;;  %v261_v61 = vmin.f32 %v219_v45, %v255_v49  ;;  %v240_v62 = vmin.f32 %v430_v47, %v234_v54 }
 0x1fe   :  { %v264_v6 = vmin.f32 %v261_v61, %v240_v62  ;;  %v267_v47 = vmax.f32 %v261_v61, %v240_v62 }
 0x202   :  { %v184_v50 = vpop.permute.xlu1 %183  ;;  %v248_v51 = vpop.permute.xlu0 %247 }
 0x203   :  { %v190_v52 = vsel %vm189_vm2, %v182_v21, %v184_v50  ;;  %v191_v22 = vsel %vm189_vm2, %v184_v50, %v186_v36  ;;  %v253_v39 = vsel %vm121_vm1, %v246_v26, %v248_v51  ;;  %v254_v53 = vsel %vm121_vm1, %v248_v51, %v250_v27 }
 0x204   :  { %v259_v55 = vmin.f32 %v217_v41, %v253_v39  ;;  %v260_v40 = vmin.f32 %v218_v42, %v254_v53  ;;  %v196_v56 = vmax.f32 %v128_v33, %v190_v52  ;;  %v197_v57 = vmax.f32 %v129_v34, %v191_v22 }
 0x206   :  { %v262_v58 = vmin.f32 %v259_v55, %v238_v48  ;;  %v263_v59 = vmin.f32 %v260_v40, %v239_v44  ;;  %v265_v63 = vmax.f32 %v259_v55, %v238_v48  ;;  %v266_v0 = vmax.f32 %v260_v40, %v239_v44 }
 0x208   :  { %v268_v1 = vmax.f32 %v196_v56, %v262_v58  ;;  %v269_v2 = vmax.f32 %v197_v57, %v263_v59 }
 0x20a   :  { %v271_v43 = vmin.f32 %v268_v1, %v265_v63  ;;  %v272_v4 = vmin.f32 %v269_v2, %v266_v0  ;;  %v188_v5 = vpop.permute.xlu0 %187 }
 0x20b   :  { %v192_v37 = vsel %vm189_vm2, %v186_v36, %v188_v5 }
 0x20c   :  { %274 = vst [vmem:[#allocation5] sm:$0xff] %v271_v43  ;;  %v198_v7 = vmax.f32 %v130_v3, %v192_v37 }
 0x20d   :  { %275 = vst [vmem:[#allocation5 + $0x8] sm:$0xff] %v272_v4 }
 0x20e   :  { %v270_v8 = vmax.f32 %v198_v7, %v264_v6 }
 0x210   :  { %v273_v9 = vmin.f32 %v270_v8, %v267_v47 }
 0x212   :  { %276 = vst [vmem:[#allocation5 + $0x10] sm:$0xff] %v273_v9 }
 0x213   :  { %287 = dma.vmem_to_hbm [thread:$0]  %s283_s14, 384, %s285_s17, [#allocation4]  }
 0x214   :  { %349 = dma.done.wait [#allocation4], 384  }
 0x215   :  { %350 = vsyncadd [#allocation4], 4294966912 }
 0x216   :  { %292 = vsyncpa [#allocation3], 1 }
 0x217   :  { %293 = vsyncpa [#allocation4], 1 }

</bundles_post_ra>
